<compile_context>
chip_gen: v7x
topology: tpu7x:2x2x1
jax: 0.10.0
libtpu: 0.0.40
codegen_flags: <defaults>
</compile_context>

<pallas_src>
import functools

import numpy as np
import jax
import jax.numpy as jnp
from jax import lax
from jax.experimental import pallas as pl
from jax.experimental.pallas import tpu as pltpu


def _extract_spans_kernel(idx_ref, starts_ref, ends_ref, out_ref,
                          sstart_ref, send_ref, sel_ref, key_ref,
                          *, K, L, N, SB, S, sort_spans):
    """Processes SB sentences per grid step, two sentences interleaved.

    idx_ref    : (SB, N) int32  original span indices, sorted by desc. score
    starts_ref : (SB, N) int32  candidate starts, pre-gathered in sorted order
    ends_ref   : (SB, N) int32  candidate ends,   pre-gathered in sorted order
    out_ref    : (SB, K) int32  selected span indices
    sstart_ref : (2, K)  int32  starts of spans selected so far (per lane)
    send_ref   : (2, K)  int32  ends   of spans selected so far (per lane)
    sel_ref    : (2, K)  int32  selected indices (only used if sort_spans)
    key_ref    : (2, K)  int32  sort keys start*(L+1)+end (only if sort_spans)
    """
    base = pl.program_id(0) * SB
    zero = jnp.zeros((), jnp.int32)

    def per_pair(p, _):
        r0 = 2 * p
        r1 = r0 + 1
        # Skip padded sentence rows entirely (S is static).
        active0 = (base + r0) < S
        active1 = (base + r1) < S

        # Pad source must be defined even if nothing gets selected (matches the
        # zeros-initialised output of the PyTorch reference).
        @pl.when(active0)
        def _():
            out_ref[r0, 0] = jnp.int32(0)

        @pl.when(active1)
        def _():
            out_ref[r1, 0] = jnp.int32(0)

        # ---- greedy non-crossing selection, two sentences interleaved ------
        def cond(carry):
            cur0, nsel0, cur1, nsel1 = carry
            go0 = active0 & (cur0 < N) & (nsel0 < K)
            go1 = active1 & (cur1 < N) & (nsel1 < K)
            return go0 | go1

        def body(carry):
            cur0, nsel0, cur1, nsel1 = carry
            step0 = active0 & (cur0 < N) & (nsel0 < K)
            step1 = active1 & (cur1 < N) & (nsel1 < K)

            # Clamp so loads stay in bounds once a lane has finished.
            c0 = jnp.minimum(cur0, N - 1)
            c1 = jnp.minimum(cur1, N - 1)

            # Pre-gathered in sorted order -> 3 independent SMEM loads / lane.
            i0 = idx_ref[r0, c0]
            s0 = starts_ref[r0, c0]
            e0 = ends_ref[r0, c0]
            i1 = idx_ref[r1, c1]
            s1 = starts_ref[r1, c1]
            e1 = ends_ref[r1, c1]

            chk0 = jnp.where(step0, nsel0, zero)
            chk1 = jnp.where(step1, nsel1, zero)

            # Crossing check against previously selected spans for BOTH lanes
            # in one loop (two independent chains per iteration), with early
            # exit as soon as both lanes are decided.  Equivalent to the
            # reference's start_to_latest_end / end_to_earliest_start maps.
            def xcond(cc):
                j, x0, x1 = cc
                more0 = (j < chk0) & jnp.logical_not(x0)
                more1 = (j < chk1) & jnp.logical_not(x1)
                return more0 | more1

            def xbody(cc):
                j, x0, x1 = cc
                a0 = sstart_ref[0, j]
                b0 = send_ref[0, j]
                a1 = sstart_ref[1, j]
                b1 = send_ref[1, j]
                h0 = ((a0 > s0) & (a0 <= e0) & (b0 > e0)) | \
                     ((b0 >= s0) & (b0 < e0) & (a0 < s0))
                h1 = ((a1 > s1) & (a1 <= e1) & (b1 > e1)) | \
                     ((b1 >= s1) & (b1 < e1) & (a1 < s1))
                x0 = x0 | ((j < chk0) & h0)
                x1 = x1 | ((j < chk1) & h1)
                return j + 1, x0, x1

            _, x0, x1 = lax.while_loop(
                xcond, xbody,
                (zero, jnp.zeros((), jnp.bool_), jnp.zeros((), jnp.bool_)))

            keep0 = step0 & jnp.logical_not(x0)
            keep1 = step1 & jnp.logical_not(x1)

            @pl.when(keep0)
            def _():
                sstart_ref[0, nsel0] = s0
                send_ref[0, nsel0] = e0
                if sort_spans:
                    sel_ref[0, nsel0] = i0
                    # Unique key per (start, end); end < L so end < L + 1.
                    key_ref[0, nsel0] = s0 * jnp.int32(L + 1) + e0
                else:
                    out_ref[r0, nsel0] = i0

            @pl.when(keep1)
            def _():
                sstart_ref[1, nsel1] = s1
                send_ref[1, nsel1] = e1
                if sort_spans:
                    sel_ref[1, nsel1] = i1
                    key_ref[1, nsel1] = s1 * jnp.int32(L + 1) + e1
                else:
                    out_ref[r1, nsel1] = i1

            return (cur0 + step0.astype(jnp.int32),
                    nsel0 + keep0.astype(jnp.int32),
                    cur1 + step1.astype(jnp.int32),
                    nsel1 + keep1.astype(jnp.int32))

        _, nsel0, _, nsel1 = lax.while_loop(cond, body, (zero, zero, zero, zero))

        # ---- per-lane finalize: optional (start, end) sort + tail padding ---
        def finalize(lane, r, nsel, active):
            @pl.when(active)
            def _():
                if sort_spans:
                    # Selection sort over the nsel selected entries using the
                    # precomputed keys (1 SMEM load + 1 compare per step).
                    def sort_outer(a, _):
                        def find_min(b, carry):
                            best_b, best_key = carry
                            kb = key_ref[lane, b]
                            better = kb < best_key
                            return (jnp.where(better, b, best_b),
                                    jnp.where(better, kb, best_key))

                        best_b, _ = lax.fori_loop(a + 1, nsel, find_min,
                                                  (a, key_ref[lane, a]))

                        @pl.when(best_b != a)
                        def _():
                            va = sel_ref[lane, a]
                            vb = sel_ref[lane, best_b]
                            ka = key_ref[lane, a]
                            kb = key_ref[lane, best_b]
                            sel_ref[lane, a] = vb
                            sel_ref[lane, best_b] = va
                            key_ref[lane, a] = kb
                            key_ref[lane, best_b] = ka
                        return 0

                    lax.fori_loop(0, nsel, sort_outer, 0)

                    def write_sorted(i2, _):
                        out_ref[r, i2] = sel_ref[lane, i2]
                        return 0

                    lax.fori_loop(0, nsel, write_sorted, 0)

                # Pad the tail with the first output index (load it once).
                pad_val = out_ref[r, 0]

                def pad_body(i2, _):
                    out_ref[r, i2] = pad_val
                    return 0

                lax.fori_loop(nsel, K, pad_body, 0)

        finalize(0, r0, nsel0, active0)
        finalize(1, r1, nsel1, active1)
        return 0

    lax.fori_loop(0, SB // 2, per_pair, 0)


def extract_spans(span_scores, candidate_starts, candidate_ends,
                  num_output_spans, max_sentence_length, sort_spans,
                  sentences_per_block=4):
    # Mirrors the PyTorch forward's `.item()`: these must be concrete values
    # (do not jit this wrapper with them as traced arguments).
    K = int(num_output_spans)
    L = int(max_sentence_length)
    S, N = span_scores.shape
    sort_spans = bool(sort_spans)

    if K <= 0:
        return jnp.zeros((S, max(K, 0)), jnp.int32)
    if sort_spans:
        assert (L + 1) * (L + 1) <= 2**31 - 1, "int32 sort key would overflow"

    # Glue: descending argsort in plain JAX; starts/ends are pre-gathered into
    # sorted order so the kernel's hot path has no dependent SMEM loads.
    # NOTE: tie-breaking of jnp.argsort on equal scores may differ from
    # torch.argsort(descending=True); selection on exact ties can then differ.
    order = jnp.argsort(-span_scores, axis=-1)
    sorted_idx = order.astype(jnp.int32)
    sorted_starts = jnp.take_along_axis(candidate_starts.astype(jnp.int32),
                                        order, axis=-1)
    sorted_ends = jnp.take_along_axis(candidate_ends.astype(jnp.int32),
                                      order, axis=-1)

    # Sentences per grid step: even (two-lane interleave), small enough that
    # the grid keeps >= ~4 steps for cross-TC load balancing on v7x; a tiny
    # batch is covered by a single block.  SMEM footprint stays small.
    SB = int(sentences_per_block)
    SB = max(2, SB + (SB % 2))
    if S <= SB:
        SB = S + (S % 2)
    else:
        while SB > 2 and (S + SB - 1) // SB < 4:
            SB -= 2

    S_pad = ((S + SB - 1) // SB) * SB
    if S_pad != S:
        pad = ((0, S_pad - S), (0, 0))
        sorted_idx = jnp.pad(sorted_idx, pad)
        sorted_starts = jnp.pad(sorted_starts, pad)
        sorted_ends = jnp.pad(sorted_ends, pad)

    kernel = functools.partial(_extract_spans_kernel, K=K, L=L, N=N, SB=SB,
                               S=S, sort_spans=sort_spans)

    def smem_spec(cols):
        return pl.BlockSpec((SB, cols), lambda g: (g, 0),
                            memory_space=pltpu.MemorySpace.SMEM)

    def run(dim_sem):
        return pl.pallas_call(
            kernel,
            out_shape=jax.ShapeDtypeStruct((S_pad, K), jnp.int32),
            grid_spec=pltpu.PrefetchScalarGridSpec(
                num_scalar_prefetch=0,
                grid=(S_pad // SB,),
                in_specs=[smem_spec(N), smem_spec(N), smem_spec(N)],
                out_specs=smem_spec(K),
                scratch_shapes=[pltpu.SMEM((2, K), jnp.int32)] * 4,
            ),
            compiler_params=pltpu.CompilerParams(dimension_semantics=dim_sem),
        )(sorted_idx, sorted_starts, sorted_ends)

    try:
        kind = jax.devices()[0].device_kind.lower()
    except Exception:  # pragma: no cover - defensive
        kind = ""

    if "v7" in kind:
        # v7x has 2 TensorCores per chip: shard the (independent) sentence grid
        # axis across cores.  SMEM scratch is physically per-core, so there is
        # no cross-core race.  Fall back to "parallel" if unsupported.
        try:
            out = run((pltpu.CORE_PARALLEL,))
        except Exception:
            out = run(("parallel",))
    else:
        out = run(("parallel",))
    return out[:S]


# ---------------- pure-Python reference (mirrors the PyTorch module) --------
def reference_extract_spans(sorted_indices, starts, ends, K, L, sort_spans):
    S, N = sorted_indices.shape
    out = np.zeros((S, K), dtype=np.int32)
    for l in range(S):
        top = []
        s2l = {}
        e2s = {}
        cur = 0
        nsel = 0
        while nsel < K and cur < N:
            i = int(sorted_indices[l, cur])
            start = int(starts[l, i])
            end = int(ends[l, i])
            crossing = False
            for j in range(start, end + 1):
                if (j in s2l and j > start and s2l[j] > end) or \
                   (j in e2s and j < end and e2s[j] < start):
                    crossing = True
                    break
            if not crossing:
                if sort_spans:
                    top.append(i)
                else:
                    out[l, nsel] = i
                nsel += 1
                if start not in s2l or end > s2l[start]:
                    s2l[start] = end
                if end not in e2s or start < e2s[end]:
                    e2s[end] = start
            cur += 1
        if sort_spans:
            top.sort(key=lambda i: (int(starts[l, i]), int(ends[l, i])))
            for i in range(min(K, nsel)):
                out[l, i] = top[i]
        for i in range(nsel, K):
            out[l, i] = out[l, 0]
    return out


if __name__ == "__main__":
    key = jax.random.PRNGKey(0)

    S = 2                 # num_sentences
    L = 16                # max_sentence_length
    MAX_WIDTH = 4

    # Deterministic, duplicate-free candidate spans (same set per sentence).
    cand = [(s, s + w) for s in range(L) for w in range(MAX_WIDTH) if s + w < L]
    N = len(cand)
    starts_1d = np.array([c[0] for c in cand], dtype=np.int32)
    ends_1d = np.array([c[1] for c in cand], dtype=np.int32)

    candidate_starts = jnp.asarray(np.tile(starts_1d, (S, 1)))
    candidate_ends = jnp.asarray(np.tile(ends_1d, (S, 1)))
    span_scores = jax.random.uniform(key, (S, N), dtype=jnp.float32)

    sorted_idx_np = np.asarray(jnp.argsort(-span_scores, axis=-1))

    for K in (6, 45):     # K=45 also exercises the "fewer than K selectable" pad path
        num_output_spans = jnp.array(K, dtype=jnp.int32)
        for sort_spans in (True, False):
            out = extract_spans(span_scores, candidate_starts, candidate_ends,
                                num_output_spans, L, sort_spans)
            out = jax.block_until_ready(out)
            ref = reference_extract_spans(sorted_idx_np,
                                          np.asarray(candidate_starts),
                                          np.asarray(candidate_ends),
                                          K, L, sort_spans)
            assert np.array_equal(np.asarray(out), ref), \
                (f"mismatch (K={K}, sort_spans={sort_spans}):\n"
                 f"{np.asarray(out)}\nvs\n{ref}")

    print("KERNEL_OK")
</pallas_src>

<mosaic_0001>
module attributes {stable_mosaic.version = 11 : i64} {
  func.func @_extract_spans_kernel(%arg0: i32, %arg1: memref<2x58xi32, #tpu.memory_space<smem>>, %arg2: memref<2x58xi32, #tpu.memory_space<smem>>, %arg3: memref<2x58xi32, #tpu.memory_space<smem>>, %arg4: memref<2x6xi32, #tpu.memory_space<smem>>, %arg5: memref<2x6xi32, #tpu.memory_space<smem>>, %arg6: memref<2x6xi32, #tpu.memory_space<smem>>, %arg7: memref<2x6xi32, #tpu.memory_space<smem>>, %arg8: memref<2x6xi32, #tpu.memory_space<smem>>) attributes {dimension_semantics = [#tpu.dimension_semantics<parallel>], iteration_bounds = array<i64: 1>, scalar_prefetch = 0 : i64, scratch_operands = 4 : i64, tpu.core_type = #tpu.core_type<tc>, window_params = [{transform_indices = @transform_0, window_bounds = array<i64: 2, 58>}, {transform_indices = @transform_1, window_bounds = array<i64: 2, 58>}, {transform_indices = @transform_2, window_bounds = array<i64: 2, 58>}, {transform_indices = @transform_3, window_bounds = array<i64: 2, 6>}]} {
    %c2_i32 = arith.constant 2 : i32
    %0 = arith.muli %arg0, %c2_i32 : i32
    %c0_i32 = arith.constant 0 : i32
    %c0_i32_0 = arith.constant 0 : i32
    %c2_i32_1 = arith.constant 2 : i32
    %1 = arith.muli %c2_i32_1, %c0_i32_0 : i32
    %c1_i32 = arith.constant 1 : i32
    %2 = arith.addi %1, %c1_i32 : i32
    %3 = arith.addi %0, %1 : i32
    %c2_i32_2 = arith.constant 2 : i32
    %4 = arith.cmpi slt, %3, %c2_i32_2 : i32
    %5 = arith.addi %0, %2 : i32
    %c2_i32_3 = arith.constant 2 : i32
    %6 = arith.cmpi slt, %5, %c2_i32_3 : i32
    %7 = arith.extui %4 : i1 to i32
    %c0_i32_4 = arith.constant 0 : i32
    %8 = arith.cmpi ne, %7, %c0_i32_4 : i32
    scf.if %8 {
      %c0_i32_9 = arith.constant 0 : i32
      %16 = arith.index_cast %1 : i32 to index
      %c0 = arith.constant 0 : index
      %17 = memref.load %arg4[%16, %c0] : memref<2x6xi32, #tpu.memory_space<smem>>
      memref.store %c0_i32_9, %arg4[%16, %c0] : memref<2x6xi32, #tpu.memory_space<smem>>
    } else {
    }
    %9 = arith.extui %6 : i1 to i32
    %c0_i32_5 = arith.constant 0 : i32
    %10 = arith.cmpi ne, %9, %c0_i32_5 : i32
    scf.if %10 {
      %c0_i32_9 = arith.constant 0 : i32
      %16 = arith.index_cast %2 : i32 to index
      %c0 = arith.constant 0 : index
      %17 = memref.load %arg4[%16, %c0] : memref<2x6xi32, #tpu.memory_space<smem>>
      memref.store %c0_i32_9, %arg4[%16, %c0] : memref<2x6xi32, #tpu.memory_space<smem>>
    } else {
    }
    %11:4 = scf.while (%arg9 = %c0_i32, %arg10 = %c0_i32, %arg11 = %c0_i32, %arg12 = %c0_i32) : (i32, i32, i32, i32) -> (i32, i32, i32, i32) {
      %c58_i32 = arith.constant 58 : i32
      %16 = arith.cmpi slt, %arg9, %c58_i32 : i32
      %17 = arith.andi %4, %16 : i1
      %c6_i32 = arith.constant 6 : i32
      %18 = arith.cmpi slt, %arg10, %c6_i32 : i32
      %19 = arith.andi %17, %18 : i1
      %c58_i32_9 = arith.constant 58 : i32
      %20 = arith.cmpi slt, %arg11, %c58_i32_9 : i32
      %21 = arith.andi %6, %20 : i1
      %c6_i32_10 = arith.constant 6 : i32
      %22 = arith.cmpi slt, %arg12, %c6_i32_10 : i32
      %23 = arith.andi %21, %22 : i1
      %24 = arith.ori %19, %23 : i1
      scf.condition(%24) %arg9, %arg10, %arg11, %arg12 : i32, i32, i32, i32
    } do {
    ^bb0(%arg9: i32, %arg10: i32, %arg11: i32, %arg12: i32):
      %c58_i32 = arith.constant 58 : i32
      %16 = arith.cmpi slt, %arg9, %c58_i32 : i32
      %17 = arith.andi %4, %16 : i1
      %c6_i32 = arith.constant 6 : i32
      %18 = arith.cmpi slt, %arg10, %c6_i32 : i32
      %19 = arith.andi %17, %18 : i1
      %c58_i32_9 = arith.constant 58 : i32
      %20 = arith.cmpi slt, %arg11, %c58_i32_9 : i32
      %21 = arith.andi %6, %20 : i1
      %c6_i32_10 = arith.constant 6 : i32
      %22 = arith.cmpi slt, %arg12, %c6_i32_10 : i32
      %23 = arith.andi %21, %22 : i1
      %c57_i32 = arith.constant 57 : i32
      %24 = arith.minsi %arg9, %c57_i32 : i32
      %c57_i32_11 = arith.constant 57 : i32
      %25 = arith.minsi %arg11, %c57_i32_11 : i32
      %26 = arith.index_cast %1 : i32 to index
      %27 = arith.index_cast %24 : i32 to index
      %28 = memref.load %arg1[%26, %27] : memref<2x58xi32, #tpu.memory_space<smem>>
      %29 = arith.index_cast %1 : i32 to index
      %30 = arith.index_cast %24 : i32 to index
      %31 = memref.load %arg2[%29, %30] : memref<2x58xi32, #tpu.memory_space<smem>>
      %32 = arith.index_cast %1 : i32 to index
      %33 = arith.index_cast %24 : i32 to index
      %34 = memref.load %arg3[%32, %33] : memref<2x58xi32, #tpu.memory_space<smem>>
      %35 = arith.index_cast %2 : i32 to index
      %36 = arith.index_cast %25 : i32 to index
      %37 = memref.load %arg1[%35, %36] : memref<2x58xi32, #tpu.memory_space<smem>>
      %38 = arith.index_cast %2 : i32 to index
      %39 = arith.index_cast %25 : i32 to index
      %40 = memref.load %arg2[%38, %39] : memref<2x58xi32, #tpu.memory_space<smem>>
      %41 = arith.index_cast %2 : i32 to index
      %42 = arith.index_cast %25 : i32 to index
      %43 = memref.load %arg3[%41, %42] : memref<2x58xi32, #tpu.memory_space<smem>>
      %44 = arith.select %19, %arg10, %c0_i32 : i32
      %45 = arith.select %23, %arg12, %c0_i32 : i32
      %false = arith.constant false
      %false_12 = arith.constant false
      %46:3 = scf.while (%arg13 = %c0_i32, %arg14 = %false, %arg15 = %false_12) : (i32, i1, i1) -> (i32, i1, i1) {
        %63 = arith.cmpi slt, %arg13, %44 : i32
        %true_16 = arith.constant true
        %64 = arith.xori %arg14, %true_16 : i1
        %65 = arith.andi %63, %64 : i1
        %66 = arith.cmpi slt, %arg13, %45 : i32
        %true_17 = arith.constant true
        %67 = arith.xori %arg15, %true_17 : i1
        %68 = arith.andi %66, %67 : i1
        %69 = arith.ori %65, %68 : i1
        scf.condition(%69) %arg13, %arg14, %arg15 : i32, i1, i1
      } do {
      ^bb0(%arg13: i32, %arg14: i1, %arg15: i1):
        %c0 = arith.constant 0 : index
        %63 = arith.index_cast %arg13 : i32 to index
        %64 = memref.load %arg5[%c0, %63] : memref<2x6xi32, #tpu.memory_space<smem>>
        %c0_16 = arith.constant 0 : index
        %65 = arith.index_cast %arg13 : i32 to index
        %66 = memref.load %arg6[%c0_16, %65] : memref<2x6xi32, #tpu.memory_space<smem>>
        %c1 = arith.constant 1 : index
        %67 = arith.index_cast %arg13 : i32 to index
        %68 = memref.load %arg5[%c1, %67] : memref<2x6xi32, #tpu.memory_space<smem>>
        %c1_17 = arith.constant 1 : index
        %69 = arith.index_cast %arg13 : i32 to index
        %70 = memref.load %arg6[%c1_17, %69] : memref<2x6xi32, #tpu.memory_space<smem>>
        %71 = arith.cmpi sgt, %64, %31 : i32
        %72 = arith.cmpi sle, %64, %34 : i32
        %73 = arith.andi %71, %72 : i1
        %74 = arith.cmpi sgt, %66, %34 : i32
        %75 = arith.andi %73, %74 : i1
        %76 = arith.cmpi sge, %66, %31 : i32
        %77 = arith.cmpi slt, %66, %34 : i32
        %78 = arith.andi %76, %77 : i1
        %79 = arith.cmpi slt, %64, %31 : i32
        %80 = arith.andi %78, %79 : i1
        %81 = arith.ori %75, %80 : i1
        %82 = arith.cmpi sgt, %68, %40 : i32
        %83 = arith.cmpi sle, %68, %43 : i32
        %84 = arith.andi %82, %83 : i1
        %85 = arith.cmpi sgt, %70, %43 : i32
        %86 = arith.andi %84, %85 : i1
        %87 = arith.cmpi sge, %70, %40 : i32
        %88 = arith.cmpi slt, %70, %43 : i32
        %89 = arith.andi %87, %88 : i1
        %90 = arith.cmpi slt, %68, %40 : i32
        %91 = arith.andi %89, %90 : i1
        %92 = arith.ori %86, %91 : i1
        %93 = arith.cmpi slt, %arg13, %44 : i32
        %94 = arith.andi %93, %81 : i1
        %95 = arith.ori %arg14, %94 : i1
        %96 = arith.cmpi slt, %arg13, %45 : i32
        %97 = arith.andi %96, %92 : i1
        %98 = arith.ori %arg15, %97 : i1
        %c1_i32_18 = arith.constant 1 : i32
        %99 = arith.addi %arg13, %c1_i32_18 : i32
        scf.yield %99, %95, %98 : i32, i1, i1
      }
      %true = arith.constant true
      %47 = arith.xori %46#1, %true : i1
      %48 = arith.andi %19, %47 : i1
      %true_13 = arith.constant true
      %49 = arith.xori %46#2, %true_13 : i1
      %50 = arith.andi %23, %49 : i1
      %51 = arith.extui %48 : i1 to i32
      %c0_i32_14 = arith.constant 0 : i32
      %52 = arith.cmpi ne, %51, %c0_i32_14 : i32
      scf.if %52 {
        %c0 = arith.constant 0 : index
        %63 = arith.index_cast %arg10 : i32 to index
        %64 = memref.load %arg5[%c0, %63] : memref<2x6xi32, #tpu.memory_space<smem>>
        memref.store %31, %arg5[%c0, %63] : memref<2x6xi32, #tpu.memory_space<smem>>
        %c0_16 = arith.constant 0 : index
        %65 = arith.index_cast %arg10 : i32 to index
        %66 = memref.load %arg6[%c0_16, %65] : memref<2x6xi32, #tpu.memory_space<smem>>
        memref.store %34, %arg6[%c0_16, %65] : memref<2x6xi32, #tpu.memory_space<smem>>
        %c0_17 = arith.constant 0 : index
        %67 = arith.index_cast %arg10 : i32 to index
        %68 = memref.load %arg7[%c0_17, %67] : memref<2x6xi32, #tpu.memory_space<smem>>
        memref.store %28, %arg7[%c0_17, %67] : memref<2x6xi32, #tpu.memory_space<smem>>
        %c17_i32 = arith.constant 17 : i32
        %69 = arith.muli %31, %c17_i32 : i32
        %70 = arith.addi %69, %34 : i32
        %c0_18 = arith.constant 0 : index
        %71 = arith.index_cast %arg10 : i32 to index
        %72 = memref.load %arg8[%c0_18, %71] : memref<2x6xi32, #tpu.memory_space<smem>>
        memref.store %70, %arg8[%c0_18, %71] : memref<2x6xi32, #tpu.memory_space<smem>>
      } else {
      }
      %53 = arith.extui %50 : i1 to i32
      %c0_i32_15 = arith.constant 0 : i32
      %54 = arith.cmpi ne, %53, %c0_i32_15 : i32
      scf.if %54 {
        %c1 = arith.constant 1 : index
        %63 = arith.index_cast %arg12 : i32 to index
        %64 = memref.load %arg5[%c1, %63] : memref<2x6xi32, #tpu.memory_space<smem>>
        memref.store %40, %arg5[%c1, %63] : memref<2x6xi32, #tpu.memory_space<smem>>
        %c1_16 = arith.constant 1 : index
        %65 = arith.index_cast %arg12 : i32 to index
        %66 = memref.load %arg6[%c1_16, %65] : memref<2x6xi32, #tpu.memory_space<smem>>
        memref.store %43, %arg6[%c1_16, %65] : memref<2x6xi32, #tpu.memory_space<smem>>
        %c1_17 = arith.constant 1 : index
        %67 = arith.index_cast %arg12 : i32 to index
        %68 = memref.load %arg7[%c1_17, %67] : memref<2x6xi32, #tpu.memory_space<smem>>
        memref.store %37, %arg7[%c1_17, %67] : memref<2x6xi32, #tpu.memory_space<smem>>
        %c17_i32 = arith.constant 17 : i32
        %69 = arith.muli %40, %c17_i32 : i32
        %70 = arith.addi %69, %43 : i32
        %c1_18 = arith.constant 1 : index
        %71 = arith.index_cast %arg12 : i32 to index
        %72 = memref.load %arg8[%c1_18, %71] : memref<2x6xi32, #tpu.memory_space<smem>>
        memref.store %70, %arg8[%c1_18, %71] : memref<2x6xi32, #tpu.memory_space<smem>>
      } else {
      }
      %55 = arith.extui %19 : i1 to i32
      %56 = arith.addi %arg9, %55 : i32
      %57 = arith.extui %48 : i1 to i32
      %58 = arith.addi %arg10, %57 : i32
      %59 = arith.extui %23 : i1 to i32
      %60 = arith.addi %arg11, %59 : i32
      %61 = arith.extui %50 : i1 to i32
      %62 = arith.addi %arg12, %61 : i32
      scf.yield %56, %58, %60, %62 : i32, i32, i32, i32
    }
    %12 = arith.extui %4 : i1 to i32
    %c0_i32_6 = arith.constant 0 : i32
    %13 = arith.cmpi ne, %12, %c0_i32_6 : i32
    scf.if %13 {
      %c0_i32_9 = arith.constant 0 : i32
      %c0_i32_10 = arith.constant 0 : i32
      %16 = arith.subi %11#1, %c0_i32_9 : i32
      %17 = arith.addi %c0_i32_9, %16 : i32
      %c1_i32_11 = arith.constant 1 : i32
      %18 = scf.for %arg9 = %c0_i32_9 to %17 step %c1_i32_11 iter_args(%arg10 = %c0_i32_10) -> (i32)  : i32 {
        %c1_i32_17 = arith.constant 1 : i32
        %27 = arith.addi %arg9, %c1_i32_17 : i32
        %c0_18 = arith.constant 0 : index
        %28 = arith.index_cast %arg9 : i32 to index
        %29 = memref.load %arg8[%c0_18, %28] : memref<2x6xi32, #tpu.memory_space<smem>>
        %30 = arith.subi %11#1, %27 : i32
        %31 = arith.addi %27, %30 : i32
        %c1_i32_19 = arith.constant 1 : i32
        %32:2 = scf.for %arg11 = %27 to %31 step %c1_i32_19 iter_args(%arg12 = %arg9, %arg13 = %29) -> (i32, i32)  : i32 {
          %c0_22 = arith.constant 0 : index
          %36 = arith.index_cast %arg11 : i32 to index
          %37 = memref.load %arg8[%c0_22, %36] : memref<2x6xi32, #tpu.memory_space<smem>>
          %38 = arith.cmpi slt, %37, %arg13 : i32
          %39 = arith.select %38, %arg11, %arg12 : i32
          %40 = arith.select %38, %37, %arg13 : i32
          scf.yield %39, %40 : i32, i32
        }
        %33 = arith.cmpi ne, %32#0, %arg9 : i32
        %34 = arith.extui %33 : i1 to i32
        %c0_i32_20 = arith.constant 0 : i32
        %35 = arith.cmpi ne, %34, %c0_i32_20 : i32
        scf.if %35 {
          %c0_22 = arith.constant 0 : index
          %36 = arith.index_cast %arg9 : i32 to index
          %37 = memref.load %arg7[%c0_22, %36] : memref<2x6xi32, #tpu.memory_space<smem>>
          %c0_23 = arith.constant 0 : index
          %38 = arith.index_cast %32#0 : i32 to index
          %39 = memref.load %arg7[%c0_23, %38] : memref<2x6xi32, #tpu.memory_space<smem>>
          %c0_24 = arith.constant 0 : index
          %40 = arith.index_cast %arg9 : i32 to index
          %41 = memref.load %arg8[%c0_24, %40] : memref<2x6xi32, #tpu.memory_space<smem>>
          %c0_25 = arith.constant 0 : index
          %42 = arith.index_cast %32#0 : i32 to index
          %43 = memref.load %arg8[%c0_25, %42] : memref<2x6xi32, #tpu.memory_space<smem>>
          %c0_26 = arith.constant 0 : index
          %44 = arith.index_cast %arg9 : i32 to index
          %45 = memref.load %arg7[%c0_26, %44] : memref<2x6xi32, #tpu.memory_space<smem>>
          memref.store %39, %arg7[%c0_26, %44] : memref<2x6xi32, #tpu.memory_space<smem>>
          %c0_27 = arith.constant 0 : index
          %46 = arith.index_cast %32#0 : i32 to index
          %47 = memref.load %arg7[%c0_27, %46] : memref<2x6xi32, #tpu.memory_space<smem>>
          memref.store %37, %arg7[%c0_27, %46] : memref<2x6xi32, #tpu.memory_space<smem>>
          %c0_28 = arith.constant 0 : index
          %48 = arith.index_cast %arg9 : i32 to index
          %49 = memref.load %arg8[%c0_28, %48] : memref<2x6xi32, #tpu.memory_space<smem>>
          memref.store %43, %arg8[%c0_28, %48] : memref<2x6xi32, #tpu.memory_space<smem>>
          %c0_29 = arith.constant 0 : index
          %50 = arith.index_cast %32#0 : i32 to index
          %51 = memref.load %arg8[%c0_29, %50] : memref<2x6xi32, #tpu.memory_space<smem>>
          memref.store %41, %arg8[%c0_29, %50] : memref<2x6xi32, #tpu.memory_space<smem>>
        } else {
        }
        %c0_i32_21 = arith.constant 0 : i32
        scf.yield %c0_i32_21 : i32
      }
      %c0_i32_12 = arith.constant 0 : i32
      %c0_i32_13 = arith.constant 0 : i32
      %19 = arith.subi %11#1, %c0_i32_12 : i32
      %20 = arith.addi %c0_i32_12, %19 : i32
      %c1_i32_14 = arith.constant 1 : i32
      %21 = scf.for %arg9 = %c0_i32_12 to %20 step %c1_i32_14 iter_args(%arg10 = %c0_i32_13) -> (i32)  : i32 {
        %c0_17 = arith.constant 0 : index
        %27 = arith.index_cast %arg9 : i32 to index
        %28 = memref.load %arg7[%c0_17, %27] : memref<2x6xi32, #tpu.memory_space<smem>>
        %29 = arith.index_cast %1 : i32 to index
        %30 = arith.index_cast %arg9 : i32 to index
        %31 = memref.load %arg4[%29, %30] : memref<2x6xi32, #tpu.memory_space<smem>>
        memref.store %28, %arg4[%29, %30] : memref<2x6xi32, #tpu.memory_space<smem>>
        %c0_i32_18 = arith.constant 0 : i32
        scf.yield %c0_i32_18 : i32
      }
      %22 = arith.index_cast %1 : i32 to index
      %c0 = arith.constant 0 : index
      %23 = memref.load %arg4[%22, %c0] : memref<2x6xi32, #tpu.memory_space<smem>>
      %c6_i32 = arith.constant 6 : i32
      %c0_i32_15 = arith.constant 0 : i32
      %24 = arith.subi %c6_i32, %11#1 : i32
      %25 = arith.addi %11#1, %24 : i32
      %c1_i32_16 = arith.constant 1 : i32
      %26 = scf.for %arg9 = %11#1 to %25 step %c1_i32_16 iter_args(%arg10 = %c0_i32_15) -> (i32)  : i32 {
        %27 = arith.index_cast %1 : i32 to index
        %28 = arith.index_cast %arg9 : i32 to index
        %29 = memref.load %arg4[%27, %28] : memref<2x6xi32, #tpu.memory_space<smem>>
        memref.store %23, %arg4[%27, %28] : memref<2x6xi32, #tpu.memory_space<smem>>
        %c0_i32_17 = arith.constant 0 : i32
        scf.yield %c0_i32_17 : i32
      }
    } else {
    }
    %14 = arith.extui %6 : i1 to i32
    %c0_i32_7 = arith.constant 0 : i32
    %15 = arith.cmpi ne, %14, %c0_i32_7 : i32
    scf.if %15 {
      %c0_i32_9 = arith.constant 0 : i32
      %c0_i32_10 = arith.constant 0 : i32
      %16 = arith.subi %11#3, %c0_i32_9 : i32
      %17 = arith.addi %c0_i32_9, %16 : i32
      %c1_i32_11 = arith.constant 1 : i32
      %18 = scf.for %arg9 = %c0_i32_9 to %17 step %c1_i32_11 iter_args(%arg10 = %c0_i32_10) -> (i32)  : i32 {
        %c1_i32_17 = arith.constant 1 : i32
        %27 = arith.addi %arg9, %c1_i32_17 : i32
        %c1 = arith.constant 1 : index
        %28 = arith.index_cast %arg9 : i32 to index
        %29 = memref.load %arg8[%c1, %28] : memref<2x6xi32, #tpu.memory_space<smem>>
        %30 = arith.subi %11#3, %27 : i32
        %31 = arith.addi %27, %30 : i32
        %c1_i32_18 = arith.constant 1 : i32
        %32:2 = scf.for %arg11 = %27 to %31 step %c1_i32_18 iter_args(%arg12 = %arg9, %arg13 = %29) -> (i32, i32)  : i32 {
          %c1_21 = arith.constant 1 : index
          %36 = arith.index_cast %arg11 : i32 to index
          %37 = memref.load %arg8[%c1_21, %36] : memref<2x6xi32, #tpu.memory_space<smem>>
          %38 = arith.cmpi slt, %37, %arg13 : i32
          %39 = arith.select %38, %arg11, %arg12 : i32
          %40 = arith.select %38, %37, %arg13 : i32
          scf.yield %39, %40 : i32, i32
        }
        %33 = arith.cmpi ne, %32#0, %arg9 : i32
        %34 = arith.extui %33 : i1 to i32
        %c0_i32_19 = arith.constant 0 : i32
        %35 = arith.cmpi ne, %34, %c0_i32_19 : i32
        scf.if %35 {
          %c1_21 = arith.constant 1 : index
          %36 = arith.index_cast %arg9 : i32 to index
          %37 = memref.load %arg7[%c1_21, %36] : memref<2x6xi32, #tpu.memory_space<smem>>
          %c1_22 = arith.constant 1 : index
          %38 = arith.index_cast %32#0 : i32 to index
          %39 = memref.load %arg7[%c1_22, %38] : memref<2x6xi32, #tpu.memory_space<smem>>
          %c1_23 = arith.constant 1 : index
          %40 = arith.index_cast %arg9 : i32 to index
          %41 = memref.load %arg8[%c1_23, %40] : memref<2x6xi32, #tpu.memory_space<smem>>
          %c1_24 = arith.constant 1 : index
          %42 = arith.index_cast %32#0 : i32 to index
          %43 = memref.load %arg8[%c1_24, %42] : memref<2x6xi32, #tpu.memory_space<smem>>
          %c1_25 = arith.constant 1 : index
          %44 = arith.index_cast %arg9 : i32 to index
          %45 = memref.load %arg7[%c1_25, %44] : memref<2x6xi32, #tpu.memory_space<smem>>
          memref.store %39, %arg7[%c1_25, %44] : memref<2x6xi32, #tpu.memory_space<smem>>
          %c1_26 = arith.constant 1 : index
          %46 = arith.index_cast %32#0 : i32 to index
          %47 = memref.load %arg7[%c1_26, %46] : memref<2x6xi32, #tpu.memory_space<smem>>
          memref.store %37, %arg7[%c1_26, %46] : memref<2x6xi32, #tpu.memory_space<smem>>
          %c1_27 = arith.constant 1 : index
          %48 = arith.index_cast %arg9 : i32 to index
          %49 = memref.load %arg8[%c1_27, %48] : memref<2x6xi32, #tpu.memory_space<smem>>
          memref.store %43, %arg8[%c1_27, %48] : memref<2x6xi32, #tpu.memory_space<smem>>
          %c1_28 = arith.constant 1 : index
          %50 = arith.index_cast %32#0 : i32 to index
          %51 = memref.load %arg8[%c1_28, %50] : memref<2x6xi32, #tpu.memory_space<smem>>
          memref.store %41, %arg8[%c1_28, %50] : memref<2x6xi32, #tpu.memory_space<smem>>
        } else {
        }
        %c0_i32_20 = arith.constant 0 : i32
        scf.yield %c0_i32_20 : i32
      }
      %c0_i32_12 = arith.constant 0 : i32
      %c0_i32_13 = arith.constant 0 : i32
      %19 = arith.subi %11#3, %c0_i32_12 : i32
      %20 = arith.addi %c0_i32_12, %19 : i32
      %c1_i32_14 = arith.constant 1 : i32
      %21 = scf.for %arg9 = %c0_i32_12 to %20 step %c1_i32_14 iter_args(%arg10 = %c0_i32_13) -> (i32)  : i32 {
        %c1 = arith.constant 1 : index
        %27 = arith.index_cast %arg9 : i32 to index
        %28 = memref.load %arg7[%c1, %27] : memref<2x6xi32, #tpu.memory_space<smem>>
        %29 = arith.index_cast %2 : i32 to index
        %30 = arith.index_cast %arg9 : i32 to index
        %31 = memref.load %arg4[%29, %30] : memref<2x6xi32, #tpu.memory_space<smem>>
        memref.store %28, %arg4[%29, %30] : memref<2x6xi32, #tpu.memory_space<smem>>
        %c0_i32_17 = arith.constant 0 : i32
        scf.yield %c0_i32_17 : i32
      }
      %22 = arith.index_cast %2 : i32 to index
      %c0 = arith.constant 0 : index
      %23 = memref.load %arg4[%22, %c0] : memref<2x6xi32, #tpu.memory_space<smem>>
      %c6_i32 = arith.constant 6 : i32
      %c0_i32_15 = arith.constant 0 : i32
      %24 = arith.subi %c6_i32, %11#3 : i32
      %25 = arith.addi %11#3, %24 : i32
      %c1_i32_16 = arith.constant 1 : i32
      %26 = scf.for %arg9 = %11#3 to %25 step %c1_i32_16 iter_args(%arg10 = %c0_i32_15) -> (i32)  : i32 {
        %27 = arith.index_cast %2 : i32 to index
        %28 = arith.index_cast %arg9 : i32 to index
        %29 = memref.load %arg4[%27, %28] : memref<2x6xi32, #tpu.memory_space<smem>>
        memref.store %23, %arg4[%27, %28] : memref<2x6xi32, #tpu.memory_space<smem>>
        %c0_i32_17 = arith.constant 0 : i32
        scf.yield %c0_i32_17 : i32
      }
    } else {
    }
    %c1_i32_8 = arith.constant 1 : i32
    return
  }
  func.func @transform_0(%arg0: i32) -> (i32, i32) {
    %c0_i32 = arith.constant 0 : i32
    %c0_i32_0 = arith.constant 0 : i32
    return %arg0, %c0_i32 : i32, i32
  }
  func.func @transform_1(%arg0: i32) -> (i32, i32) {
    %c0_i32 = arith.constant 0 : i32
    %c0_i32_0 = arith.constant 0 : i32
    return %arg0, %c0_i32 : i32, i32
  }
  func.func @transform_2(%arg0: i32) -> (i32, i32) {
    %c0_i32 = arith.constant 0 : i32
    %c0_i32_0 = arith.constant 0 : i32
    return %arg0, %c0_i32 : i32, i32
  }
  func.func @transform_3(%arg0: i32) -> (i32, i32) {
    %c0_i32 = arith.constant 0 : i32
    %c0_i32_0 = arith.constant 0 : i32
    return %arg0, %c0_i32 : i32, i32
  }
}

</mosaic_0001>

<bundles_post_ra>
// kernel: tpu_custom_call.1
= control target key start
LH: loop header
LB: loop body
LE: loop exit
PB: predicated region body
PF: predicated region fallthrough
CT: control target
= control target key end

     0   :  { %8 = vsyncpa [#allocation7], 0  ;;  %s1513_s0 = inlined_call_operand.hbm [shape: s32[2,58], index: 0, kind: input, shape index: {}]   ;;  %s1514_s1 = inlined_call_operand.vmem [shape: s32[2,58], index: 1, kind: input, shape index: {}]   ;;  %s1515_s2 = inlined_call_operand.vmem [shape: s32[2,58], index: 2, kind: input, shape index: {}]   ;;  %s1516_s3 = inlined_call_operand.hbm [shape: s32[2,6], index: 3, kind: output, shape index: {}]  }
   0x1   :  { %9 = vsyncpa [#allocation9], 0 }
   0x2   :  { %10 = vsyncpa [#allocation12], 0 }
   0x3   :  { %11 = vsyncpa [#allocation8], 0  ;;  %s26_s14 = sshll.u32 %s1514_s1, 4  ;;  %s823_s17 = scalar_lea.hbm %s1513_s0, 32  ;;  %s27_s14 = int_to_ptr.vmem [resolvable:$true] %s26_s14 }
   0x4   :  { %p824_p0 = scmp.ne.s32.totalorder %s1513_s0, %s823_s17  ;;  %p827_p1 = scmp.lt.u32.totalorder %s823_s17, %s1513_s0 }
   0x6   :  { %p829_p2 = pnand %p827_p1, %p824_p0 }
   0x8   :  { %832 = shalt.err (!%p829_p2)
}
   0x9   :  { %s1059_s22 = smov [#allocation6]   ;;  %s833_s1 = scalar_lea.vmem %s27_s14, 32 }
   0xa   :  { %19 = dma.hbm_to_smem %s1513_s0, 32, %s1059_s22, [#allocation7]  }
   0xb   :  { %p834_p3 = scmp.ne.s32.totalorder %s27_s14, %s833_s1  ;;  %p838_p4 = scmp.lt.s32.totalorder %s27_s14, %s27_s14 }
   0xc   :  { %p839_p5 = scmp.lt.s32.totalorder %s833_s1, %s833_s1 }
   0xe   :  { %p840_p6 = por %p839_p5, %p838_p4 }
  0x10   :  { %p841_p7 = pnand %p840_p6, %p834_p3 }
  0x12   :  { %844 = shalt.err (!%p841_p7)
}
  0x13   :  { %s1060_s25 = smov [#allocation10]   ;;  %s36_s28 = sshll.u32 %s1515_s2, 4  ;;  %s37_s28 = int_to_ptr.vmem [resolvable:$true] %s36_s28 }
  0x14   :  { %29 = dma.vmem_to_smem %s27_s14, 32, %s1060_s25, [#allocation9]  }
  0x15   :  { %s845_s29 = scalar_lea.vmem %s37_s28, 32  ;;  %p850_p9 = scmp.lt.s32.totalorder %s37_s28, %s37_s28 }
  0x16   :  { %p846_p8 = scmp.ne.s32.totalorder %s37_s28, %s845_s29  ;;  %p851_p10 = scmp.lt.s32.totalorder %s845_s29, %s845_s29 }
  0x18   :  { %p852_p11 = por %p851_p10, %p850_p9 }
  0x1a   :  { %p853_p12 = pnand %p852_p11, %p846_p8 }
  0x1c   :  { %856 = shalt.err (!%p853_p12)
}
  0x1d   :  { %s1061_s0 = smov [#allocation11]  }
  0x1e   :  { %39 = dma.vmem_to_smem %s37_s28, 32, %s1061_s0, [#allocation12]  }
  0x1f   :  { %959 = dma.done.wait [#allocation7], 32  }
  0x20   :  { %960 = vsyncadd [#allocation7], 4294967264 }
  0x21   :  { %961 = dma.done.wait [#allocation9], 32  }
  0x22   :  { %962 = vsyncadd [#allocation9], 4294967264 }
  0x23   :  { %963 = dma.done.wait [#allocation12], 32  }
  0x24   :  { %964 = vsyncadd [#allocation12], 4294967264 }
  0x25   :  { %49 = sfence }
  0x26   :  { %s1062_s30 = smov 0   ;;  %s1102_s2 = smov 0  }
  0x27   :  { %58 = sst [smem:[#allocation13]] %s1062_s30  ;;  %s1104_s4 = smov 0  }
  0x28   :  { %63 = sst [smem:[#allocation13 + $0x80]] %s1062_s30  ;;  %s1106_s5 = smov 0  }
  0x29   :  { %s1108_s6 = smov 0  }
  0x2a LB: > { %p85_p13 = scmp.lt.s32.totalorder %s981_s6, 58  ;;  %p88_p0 = scmp.lt.s32.totalorder %s977_s5, 6  ;;  %s981_s6 = sphi %s1108_s6, %s220_s6   ;;  %s977_s5 = sphi %s1106_s5, %s1565_s5   ;;  %s973_s4 = sphi %s1104_s4, %s224_s4   ;;  %s969_s2 = sphi %s1102_s2, %s1564_s2  }
  0x2b   : > { %p91_p1 = scmp.lt.s32.totalorder %s973_s4, 58  ;;  %p94_p2 = scmp.lt.s32.totalorder %s969_s2, 6 }
  0x2c   : > { %p1126_p3 = pnand %p88_p0, %p85_p13  ;;  %p97_p4 = scmp.lt.s32.totalorder %s981_s6, 57 }
  0x2d   : > { %p1131_p5 = pnand %p94_p2, %p91_p1  ;;  %p99_p6 = scmp.lt.s32.totalorder %s973_s4, 57 }
  0x2e   : > { %s1521_s7 = scalar_select %p1126_p3, 1, 0 }
  0x2f   : > { %s1522_s8 = scalar_select %p1131_p5, 1, 0 }
  0x30   : > { %s98_s9 = scalar_select %p97_p4, %s981_s6, 57 }
  0x31   : > { %s100_s10 = scalar_select %p99_p6, %s973_s4, 57 }
  0x32   : > { %s1142_s11 = sld [smem:[#allocation6 + %s98_s9]]  ;;  %p1166_p12 = pmov 0  }
  0x33   : > { %s1144_s12 = sld [smem:[#allocation10 + %s98_s9]]  ;;  %s104_s14 = sshra.s32 %s100_s10, 7 }
  0x34   : > { %s1146_s13 = sld [smem:[#allocation11 + %s98_s9]]  ;;  %s580_s15 = sshll.u32 %s104_s14, 7 }
  0x35   : > { %s109_s16 = sand.u32 127, %s100_s10  ;;  %s581_s17 = sadd.s32 128, %s580_s15 }
  0x36   : > { %s110_s18 = sadd.s32 %s581_s17, %s109_s16  ;;  %p1170_p13 = pmov 0  }
  0x37   : > { %s1148_s19 = sld [smem:[#allocation6 + %s110_s18]] }
  0x38   : > { %s1150_s20 = sld [smem:[#allocation10 + %s110_s18]] }
  0x39   : > { %s1152_s21 = sld [smem:[#allocation11 + %s110_s18]] }
  0x3a   : > { %s1157_s22 = scalar_select %p1126_p3, 0, %s977_s5 }
  0x3b   : > { %s1162_s23 = scalar_select %p1131_p5, 0, %s969_s2 }
  0x3c   : > { %p546_p9 = scmp.gt.s32.totalorder %s1157_s22, 0 }
  0x3d   : > { %p548_p10 = scmp.gt.s32.totalorder %s1162_s23, 0 }
  0x3f   : > { %p453_p11 = por %p548_p10, %p546_p9 }
  0x40   : > { %p1174_p0 = pmov (%p453_p11), 0   ;;  %p1178_p1 = pmov (%p453_p11), 0  }
  0x41   : > { %455 = sbr.rel (!%p453_p11) target bundleno = 125 (0x7d), region = 162  ;;  %s1182_s30 = smov (%p453_p11), 0  }
  0x48 LB: >> { %s1531_s9 = scalar_select %p985_p0, 1, 0  ;;  %s993_s30 = sphi %s1182_s30, %s1549_s30   ;;  %p989_p1 = pphi %p1178_p1, %p1548_p1   ;;  %p985_p0 = pphi %p1174_p0, %p1545_p0  }
  0x49   : >> { %s1532_s10 = scalar_select %p989_p1, 1, 0 }
  0x4a   : >> { %s132_s14 = sld [smem:[#allocation2 + %s993_s30]]  ;;  %s134_s16 = sshra.s32 %s993_s30, 7 }
  0x4b   : >> { %s133_s15 = sld [smem:[#allocation3 + %s993_s30]]  ;;  %s584_s17 = sshll.u32 %s134_s16, 7 }
  0x4c   : >> { %s139_s18 = sand.u32 127, %s993_s30  ;;  %s585_s24 = sadd.s32 128, %s584_s17 }
  0x4d   : >> { %s140_s1 = sadd.s32 %s585_s24, %s139_s18  ;;  %s1216_s27 = sadd.s32 1, %s993_s30  }
  0x4e   : >> { %s1207_s25 = sld [smem:[#allocation2 + %s140_s1]] }
  0x4f   : >> { %s142_s26 = sld [smem:[#allocation3 + %s140_s1]] }
  0x50   : >> { %p143_p4 = scmp.gt.s32.totalorder %s132_s14, %s1144_s12  ;;  %p144_p6 = scmp.le.s32.totalorder %s132_s14, %s1146_s13 }
  0x51   : >> { %p147_p9 = scmp.gt.s32.totalorder %s133_s15, %s1146_s13  ;;  %p150_p10 = scmp.ge.s32.totalorder %s133_s15, %s1144_s12 }
  0x52   : >> { %p145_p11 = pnand %p144_p6, %p143_p4  ;;  %p151_p12 = scmp.lt.s32.totalorder %s133_s15, %s1146_s13 }
  0x53   : >> { %p154_p13 = scmp.lt.s32.totalorder %s132_s14, %s1144_s12 }
  0x54   : >> { %p146_p8 = pneg %p145_p11  ;;  %p152_p7 = pnand %p151_p12, %p150_p10 }
  0x55   : >> { %p158_p2 = scmp.gt.s32.totalorder %s1207_s25, %s1150_s20  ;;  %p159_p5 = scmp.le.s32.totalorder %s1207_s25, %s1152_s21 }
  0x56   : >> { %p1222_p3 = pnand %p147_p9, %p146_p8  ;;  %p153_p0 = pneg %p152_p7 }
  0x57   : >> { %p160_p4 = pnand %p159_p5, %p158_p2  ;;  %p162_p6 = scmp.gt.s32.totalorder %s142_s26, %s1152_s21 }
  0x58   : >> { %p149_p1 = pneg %p1222_p3  ;;  %p155_p11 = pnand %p154_p13, %p153_p0 }
  0x59   : >> { %p161_p10 = pneg %p160_p4  ;;  %p165_p12 = scmp.ge.s32.totalorder %s142_s26, %s1150_s20 }
  0x5a   : >> { %p156_p8 = pneg %p155_p11  ;;  %p166_p9 = scmp.lt.s32.totalorder %s142_s26, %s1152_s21 }
  0x5b   : >> { %p1231_p7 = pnand %p162_p6, %p161_p10  ;;  %p169_p2 = scmp.lt.s32.totalorder %s1207_s25, %s1150_s20 }
  0x5c   : >> { %p157_p5 = por %p156_p8, %p149_p1  ;;  %p167_p3 = pnand %p166_p9, %p165_p12 }
  0x5d   : >> { %p1535_p13 = scmp.lt.s32.totalorder %s993_s30, %s1157_s22  ;;  %p164_p11 = pneg %p1231_p7 }
  0x5e   : >> { %p168_p0 = pneg %p167_p3  ;;  %p177_p1 = scmp.lt.s32.totalorder %s993_s30, %s1162_s23 }
  0x5f   : >> { %p174_p4 = pnand %p1535_p13, %p157_p5  ;;  %p1536_p9 = scmp.ne.s32.totalorder %s1532_s10, 0 }
  0x60   : >> { %p170_p6 = pnand %p169_p2, %p168_p0  ;;  %p1540_p0 = scmp.ne.s32.totalorder %s1531_s9, 0 }
  0x61   : >> { %p175_p10 = pneg %p174_p4  ;;  %p120_p4 = scmp.lt.s32.totalorder %s1216_s27, %s1157_s22 }
  0x62   : >> { %p171_p8 = pneg %p170_p6  ;;  %s1549_s30 = smov %s1216_s27 }
  0x63   : >> { %p1246_p12 = por %p1536_p9, %p175_p10  }
  0x64   : >> { %p172_p5 = por %p171_p8, %p164_p11  ;;  %p124_p11 = scmp.lt.s32.totalorder %s1216_s27, %s1162_s23 }
  0x65   : >> { %p1539_p3 = pmov %p1246_p12 }
  0x66   : >> { %p178_p13 = pnand %p177_p1, %p172_p5 }
  0x67   : >> { %p121_p6 = pneg %p1539_p3 }
  0x68   : >> { %p179_p7 = pneg %p178_p13 }
  0x69   : >> { %p122_p1 = pnand %p121_p6, %p120_p4 }
  0x6a   : >> { %p1252_p0 = por %p1540_p0, %p179_p7  }
  0x6b   : >> { %p123_p9 = pneg %p122_p1  ;;  %p1548_p1 = pmov %p1539_p3 }
  0x6c   : >> { %p1542_p2 = pmov %p1252_p0 }
  0x6e   : >> { %p125_p10 = pneg %p1542_p2  ;;  %p1545_p0 = pmov %p1542_p2 }
  0x70   : >> { %p126_p8 = pnand %p125_p10, %p124_p11 }
  0x72   : >> { %p127_p12 = pneg %p126_p8 }
  0x74   : >> { %p128_p5 = por %p127_p12, %p123_p9 }
  0x75   : > { %p1552_p12 = pmov (!%p128_p5), %p1542_p2  ;;  %p1555_p13 = pmov (!%p128_p5), %p1539_p3 }
  0x76   : > { %131 = sbr.rel (%p128_p5) target bundleno = 72 (0x48), region = 168 }
  0x7d PF: > { %p182_p7 = pneg %p1001_p13  ;;  %p185_p3 = pneg %p997_p12  ;;  %p1001_p13 = pphi %p1170_p13, %p1555_p13   ;;  %p997_p12 = pphi %p1166_p12, %p1552_p12  }
  0x7e   : > { %p1556_p0 = scmp.ne.s32.totalorder %s1521_s7, 0  ;;  %p1559_p13 = scmp.ne.s32.totalorder %s1522_s8, 0 }
  0x7f   : > { %s196_s17 = smul.u32 17, %s1144_s12  ;;  %s190_s18 = scalar_lea.smem [#allocation2], %s977_s5 }
  0x80   : > { %p1557_p2 = pneg %p1556_p0  ;;  %p1560_p6 = pneg %p1559_p13 }
  0x81   : > { %s192_s24 = scalar_lea.smem [#allocation3], %s977_s5  ;;  %s197_s1 = sadd.s32 %s196_s17, %s1146_s13 }
  0x82   : > { %p1300_p4 = pnand %p182_p7, %p1557_p2  ;;  %p1307_p11 = pnand %p185_p3, %p1560_p6 }
  0x83   : > { %s194_s25 = scalar_lea.smem [#allocation4], %s977_s5  ;;  %s198_s26 = scalar_lea.smem [#allocation5], %s977_s5 }
  0x84   : > { %597 = sst [smem:[%s190_s18]] (!%p1300_p4), %s1144_s12  ;;  %s202_s27 = sshra.s32 %s969_s2, 7 }
  0x85   : > { %598 = sst [smem:[%s192_s24]] (!%p1300_p4), %s1146_s13  ;;  %s207_s28 = sand.u32 127, %s969_s2 }
  0x86   : > { %599 = sst [smem:[%s194_s25]] (!%p1300_p4), %s1142_s11  ;;  %s551_s12 = sshll.u32 %s202_s27, 7 }
  0x87   : > { %600 = sst [smem:[%s198_s26]] (!%p1300_p4), %s197_s1  ;;  %s397_s29 = sadd.s32 %s551_s12, %s207_s28 }
  0x88   : > { %s215_s0 = smul.u32 17, %s1150_s20  ;;  %s398_s14 = scalar_lea.smem [#allocation2], %s397_s29 }
  0x89   : > { %s399_s13 = scalar_lea.smem %s398_s14, 128 [#allocation2]  ;;  %s402_s11 = scalar_lea.smem [#allocation3], %s397_s29 }
  0x8a   : > { %s403_s15 = scalar_lea.smem %s402_s11, 128 [#allocation3]  ;;  %602 = sst [smem:[%s399_s13]] (!%p1307_p11), %s1150_s20 }
  0x8b   : > { %603 = sst [smem:[%s403_s15]] (!%p1307_p11), %s1152_s21  ;;  %s406_s30 = scalar_lea.smem [#allocation4], %s397_s29 }
  0x8c   : > { %s407_s9 = scalar_lea.smem %s406_s30, 128 [#allocation4]  ;;  %s216_s10 = sadd.s32 %s215_s0, %s1152_s21 }
  0x8d   : > { %604 = sst [smem:[%s407_s9]] (!%p1307_p11), %s1148_s19  ;;  %s410_s16 = scalar_lea.smem [#allocation5], %s397_s29 }
  0x8e   : > { %s411_s17 = scalar_lea.smem %s410_s16, 128 [#allocation5] }
  0x8f   : > { %605 = sst [smem:[%s411_s17]] (!%p1307_p11), %s216_s10 }
  0x90   : > { %s555_s18 = scalar_select %p1556_p0, 0, 1 }
  0x91   : > { %s556_s24 = scalar_select %p1300_p4, 0, 1 }
  0x92   : > { %s220_s6 = sadd.s32 %s981_s6, %s555_s18  }
  0x93   : > { %s1349_s5 = sadd.s32 %s977_s5, %s556_s24   ;;  %p69_p10 = scmp.lt.s32.totalorder %s220_s6, 58 }
  0x94   : > { %s1562_s1 = smov %s1349_s5 }
  0x95   : > { %s557_s20 = scalar_select %p1559_p13, 0, 1 }
  0x96   : > { %s558_s25 = scalar_select %p1307_p11, 0, 1 }
  0x97   : > { %s224_s4 = sadd.s32 %s973_s4, %s557_s20   ;;  %p72_p1 = scmp.lt.s32.totalorder %s1562_s1, 6 }
  0x98   : > { %s1357_s2 = sadd.s32 %s969_s2, %s558_s25   ;;  %p75_p8 = scmp.lt.s32.totalorder %s224_s4, 58 }
  0x99   : > { %s1563_s26 = smov %s1357_s2  ;;  %p73_p12 = pnand %p72_p1, %p69_p10 }
  0x9a   : > { %p78_p9 = scmp.lt.s32.totalorder %s1563_s26, 6  ;;  %s1564_s2 = smov %s1563_s26 }
  0x9b   : > { %p74_p7 = pneg %p73_p12  ;;  %s1565_s5 = smov %s1562_s1 }
  0x9c   : > { %p79_p5 = pnand %p78_p9, %p75_p8 }
  0x9e   : > { %p80_p3 = pneg %p79_p5 }
  0xa0   : > { %p81_p0 = por %p80_p3, %p74_p7 }
  0xa1   :  { %p561_p2 = scmp.le.s32.totalorder (!%p81_p0), %s1562_s1, 0 }
  0xa2   :  { %84 = sbr.rel (%p81_p0) target bundleno = 42 (0x2a), region = 179 }
  0xa9   :  { %502 = sbr.rel (%p561_p2) target bundleno = 224 (0xe0), region = 195  ;;  %s1374_s7 = smov (!%p561_p2), 0  }
  0xb0 LB: > { %s1380_s8 = sadd.s32 1, %s1005_s7   ;;  %s237_s19 = sld [smem:[#allocation5 + %s1005_s7]]   ;;  %s1005_s7 = sphi %s1374_s7, %s1567_s7  }
  0xb1   : > { %p490_p4 = scmp.ge.s32.totalorder %s1380_s8, %s1562_s1  ;;  %s1019_s2 = smov %s1005_s7  }
  0xb2   : > { %s1011_s5 = smov (!%p490_p4), %s1005_s7   ;;  %s1015_s6 = smov (!%p490_p4), %s1380_s8  }
  0xb3   : > { %493 = sbr.rel (%p490_p4) target bundleno = 205 (0xcd), region = 184 }
  0xb6   : > { %s1007_s4 = smov (!%p490_p4), %s237_s19  }
  0xba LB: >> { %s246_s21 = sld [smem:[#allocation5 + %s1017_s6]]  ;;  %s1017_s6 = sphi %s1015_s6, %s241_s6   ;;  %s1013_s5 = sphi %s1011_s5, %s1012_s5   ;;  %s1009_s4 = sphi %s1007_s4, %s1008_s4  }
  0xc0   : >> { %p247_p13 = scmp.lt.s32.totalorder %s246_s21, %s1009_s4 }
  0xc2   : >> { %s248_s22 = scalar_select %p247_p13, %s1017_s6, %s1013_s5  }
  0xc3   : >> { %s1571_s21 = smov (!%p247_p13, %s246_s21), %s1009_s4  ;;  %s241_s6 = sadd.s32 1, %s1017_s6  }
  0xc4   : >> { %p240_p6 = scmp.ge.s32.totalorder %s241_s6, %s1562_s1  ;;  %s1008_s4 = smov %s1571_s21  }
  0xc5   : >> { %s1012_s5 = smov %s248_s22   ;;  %s1020_s2 = smov (%p240_p6), %s248_s22  }
  0xc6   : > { %243 = sbr.rel (!%p240_p6) target bundleno = 186 (0xba), region = 190 }
  0xcd PF: > { %p1393_p11 = scmp.ne.s32.totalorder %s1021_s2, %s1005_s7  ;;  %s258_s9 = scalar_lea.smem [#allocation4], %s1005_s7  ;;  %s1021_s2 = sphi %s1019_s2, %s1020_s2  }
  0xce   : > { %s260_s10 = scalar_lea.smem [#allocation4], %s1021_s2  ;;  %s262_s16 = scalar_lea.smem [#allocation5], %s1005_s7 }
  0xcf   : > { %s607_s27 = scalar_select %p1393_p11, [#allocation4], [#allocation14] }
  0xd0   : > { %s608_s28 = scalar_select %p1393_p11, %s1005_s7, 0 }
  0xd1   : > { %s609_s12 = scalar_select %p1393_p11, [#allocation4], [#allocation15] }
  0xd2   : > { %s254_s29 = sld [smem:[%s607_s27 + %s608_s28]]  ;;  %s264_s17 = scalar_lea.smem [#allocation5], %s1021_s2 }
  0xd3   : > { %s610_s0 = scalar_select %p1393_p11, %s1021_s2, 0 }
  0xd4   : > { %s611_s14 = scalar_select %p1393_p11, [#allocation5], [#allocation16] }
  0xd5   : > { %s255_s13 = sld [smem:[%s609_s12 + %s610_s0]]  ;;  %s1567_s7 = smov %s1380_s8 }
  0xd6   : > { %s613_s11 = scalar_select %p1393_p11, [#allocation5], [#allocation17] }
  0xd7   : > { %s256_s15 = sld [smem:[%s611_s14 + %s608_s28]] }
  0xd8   : > { %s257_s30 = sld [smem:[%s613_s11 + %s610_s0]] }
  0xd9   :  { %235 = sbr.rel (!%p490_p4) target bundleno = 176 (0xb0), region = 201 }
  0xdb   : > { %615 = sst [smem:[%s258_s9]] (%p1393_p11), %s255_s13 }
  0xdc   : > { %616 = sst [smem:[%s260_s10]] (%p1393_p11), %s254_s29 }
  0xde   : > { %617 = sst [smem:[%s262_s16]] (%p1393_p11), %s257_s30 }
  0xdf   : > { %618 = sst [smem:[%s264_s17]] (%p1393_p11), %s256_s15 }
  0xe0 PF:  { %507 = sbr.rel (%p561_p2) target bundleno = 242 (0xf2), region = 206  ;;  %s1023_s18 = smov (!%p561_p2), 0  }
  0xe7 LB: > { %s272_s24 = sld [smem:[#allocation4 + %s1025_s18]]  ;;  %s273_s20 = scalar_lea.smem [#allocation13], %s1025_s18  ;;  %s1025_s18 = sphi %s1023_s18, %s269_s18  }
  0xe8   : > { %s269_s18 = sadd.s32 1, %s1025_s18  }
  0xe9   : > { %p268_p10 = scmp.ge.s32.totalorder %s269_s18, %s1562_s1 }
  0xeb   :  { %271 = sbr.rel (!%p268_p10) target bundleno = 231 (0xe7), region = 212 }
  0xed   : > { %274 = sst [smem:[%s273_s20]] %s272_s24 }
  0xf2 PF:  { %s275_s25 = sld [smem:[#allocation13]]  ;;  %p511_p1 = scmp.ge.s32.totalorder %s1562_s1, 6 }
  0xf3   :  { %s1027_s7 = smov (!%p511_p1), %s1562_s1  }
  0xf4   :  { %512 = sbr.rel (%p511_p1) target bundleno = 261 (0x105), region = 217 }
  0xfb LB: > { %s282_s8 = scalar_lea.smem [#allocation13], %s1029_s7  ;;  %s279_s7 = sadd.s32 1, %s1029_s7   ;;  %s1029_s7 = sphi %s1027_s7, %s279_s7  }
  0xfc   : > { %283 = sst [smem:[%s282_s8]] %s275_s25  ;;  %p278_p8 = scmp.ge.s32.totalorder %s279_s7, 6 }
  0xfe   :  { %281 = sbr.rel (!%p278_p8) target bundleno = 251 (0xfb), region = 223 }
 0x105 PF:  { %p564_p9 = scmp.le.s32.totalorder %s1563_s26, 0 }
 0x106   :  { %s1434_s19 = smov (!%p564_p9), 0  }
 0x107   :  { %528 = sbr.rel (%p564_p9) target bundleno = 327 (0x147), region = 239 }
 0x10e LB: > { %s1440_s1 = sadd.s32 1, %s1033_s19   ;;  %s294_s2 = sshra.s32 %s1033_s19, 7  ;;  %s1033_s19 = sphi %s1434_s19, %s1569_s19  }
 0x10f   : > { %s1443_s4 = sshll.u32 %s294_s2, 7  ;;  %s299_s5 = sand.u32 127, %s1033_s19 }
 0x110   : > { %s589_s6 = sadd.s32 128, %s1443_s4  ;;  %p516_p12 = scmp.ge.s32.totalorder %s1440_s1, %s1563_s26 }
 0x111   : > { %s1449_s21 = sadd.s32 %s589_s6, %s299_s5  ;;  %s1047_s23 = smov %s1033_s19  }
 0x112   : > { %s301_s22 = sld [smem:[#allocation5 + %s1449_s21]]   ;;  %519 = sbr.rel (%p516_p12) target bundleno = 304 (0x130), region = 228 }
 0x113   : > { %s1039_s28 = smov (!%p516_p12), %s1033_s19   ;;  %s1043_s12 = smov (!%p516_p12), %s1440_s1  }
 0x118   : > { %s1035_s27 = smov (!%p516_p12), %s301_s22  }
 0x119 LB: >> { %s310_s29 = sshra.s32 %s1045_s12, 7  ;;  %s315_s0 = sand.u32 127, %s1045_s12  ;;  %s1045_s12 = sphi %s1043_s12, %s305_s12   ;;  %s1041_s28 = sphi %s1039_s28, %s1040_s28   ;;  %s1037_s27 = sphi %s1035_s27, %s1036_s27  }
 0x11a   : >> { %s590_s14 = sshll.u32 %s310_s29, 7 }
 0x11b   : >> { %s591_s13 = sadd.s32 128, %s590_s14 }
 0x11c   : >> { %s316_s11 = sadd.s32 %s591_s13, %s315_s0 }
 0x11d   : >> { %s317_s15 = sld [smem:[#allocation5 + %s316_s11]] }
 0x123   : >> { %p318_p5 = scmp.lt.s32.totalorder %s317_s15, %s1037_s27 }
 0x125   : >> { %s319_s30 = scalar_select %p318_p5, %s1045_s12, %s1041_s28  }
 0x126   : >> { %s1573_s15 = smov (!%p318_p5, %s317_s15), %s1037_s27  ;;  %s305_s12 = sadd.s32 1, %s1045_s12  }
 0x127   : >> { %p304_p7 = scmp.ge.s32.totalorder %s305_s12, %s1563_s26  ;;  %s1036_s27 = smov %s1573_s15  }
 0x128   : >> { %s1040_s28 = smov %s319_s30   ;;  %s1048_s23 = smov (%p304_p7), %s319_s30  }
 0x129   : > { %307 = sbr.rel (!%p304_p7) target bundleno = 281 (0x119), region = 234 }
 0x130 PF: > { %p1462_p3 = scmp.ne.s32.totalorder %s1049_s23, %s1033_s19  ;;  %s326_s10 = sshra.s32 %s1049_s23, 7  ;;  %s1049_s23 = sphi %s1047_s23, %s1048_s23  }
 0x131   : > { %s331_s16 = sand.u32 127, %s1049_s23  ;;  %s592_s18 = sshll.u32 %s326_s10, 7 }
 0x132   : > { %s620_s17 = scalar_select %p1462_p3, [#allocation4], [#allocation18] }
 0x133   : > { %s1575_s21 = smov (!%p1462_p3, %s1449_s21), 0  ;;  %s419_s24 = sadd.s32 %s1443_s4, %s299_s5 }
 0x134   : > { %s325_s20 = sld [smem:[%s620_s17 + %s1575_s21]]  ;;  %s593_s25 = sadd.s32 128, %s592_s18 }
 0x135   : > { %s332_s7 = sadd.s32 %s593_s25, %s331_s16  ;;  %s420_s22 = scalar_lea.smem [#allocation4], %s419_s24 }
 0x136   : > { %s622_s8 = scalar_select %p1462_p3, [#allocation4], [#allocation19] }
 0x137   : > { %s1577_s7 = smov (!%p1462_p3, %s332_s7), 0  ;;  %s421_s23 = scalar_lea.smem %s420_s22, 128 [#allocation4] }
 0x138   : > { %s624_s2 = scalar_select %p1462_p3, [#allocation5], [#allocation20] }
 0x139   : > { %s333_s6 = sld [smem:[%s622_s8 + %s1577_s7]]  ;;  %s423_s28 = sadd.s32 %s592_s18, %s331_s16 }
 0x13a   : > { %s334_s27 = sld [smem:[%s624_s2 + %s1575_s21]]  ;;  %s424_s5 = scalar_lea.smem [#allocation4], %s423_s28 }
 0x13b   : > { %s626_s19 = scalar_select %p1462_p3, [#allocation5], [#allocation21] }
 0x13c   : > { %s425_s12 = scalar_lea.smem %s424_s5, 128 [#allocation4]  ;;  %s428_s29 = scalar_lea.smem [#allocation5], %s419_s24 }
 0x13d   : > { %s335_s4 = sld [smem:[%s626_s19 + %s1577_s7]]  ;;  %s429_s0 = scalar_lea.smem %s428_s29, 128 [#allocation5] }
 0x13e   : > { %s432_s14 = scalar_lea.smem [#allocation5], %s423_s28  ;;  %s1569_s19 = smov %s1440_s1 }
 0x13f   : > { %628 = sst [smem:[%s421_s23]] (%p1462_p3), %s333_s6  ;;  %s433_s13 = scalar_lea.smem %s432_s14, 128 [#allocation5] }
 0x140   : > { %629 = sst [smem:[%s425_s12]] (%p1462_p3), %s325_s20  ;;  %292 = sbr.rel (!%p516_p12) target bundleno = 270 (0x10e), region = 245 }
 0x143   : > { %630 = sst [smem:[%s429_s0]] (%p1462_p3), %s335_s4 }
 0x144   : > { %631 = sst [smem:[%s433_s13]] (%p1462_p3), %s334_s27 }
 0x147 PF:  { %533 = sbr.rel (%p564_p9) target bundleno = 348 (0x15c), region = 250  ;;  %s1051_s21 = smov (!%p564_p9), 0  }
 0x14e LB: > { %s350_s11 = sshra.s32 %s1053_s21, 7  ;;  %s355_s15 = sand.u32 127, %s1053_s21  ;;  %s1053_s21 = sphi %s1051_s21, %s347_s21  }
 0x14f   : > { %s594_s30 = sshll.u32 %s350_s11, 7  ;;  %s347_s21 = sadd.s32 1, %s1053_s21  }
 0x150   : > { %s595_s9 = sadd.s32 128, %s594_s30  ;;  %s435_s10 = sadd.s32 %s594_s30, %s355_s15 }
 0x151   : > { %s356_s16 = sadd.s32 %s595_s9, %s355_s15  ;;  %s436_s18 = scalar_lea.smem [#allocation13], %s435_s10 }
 0x152   : > { %s357_s17 = sld [smem:[#allocation4 + %s356_s16]]  ;;  %s437_s24 = scalar_lea.smem %s436_s18, 128 [#allocation13] }
 0x153   : > { %p346_p0 = scmp.ge.s32.totalorder %s347_s21, %s1563_s26 }
 0x155   :  { %349 = sbr.rel (!%p346_p0) target bundleno = 334 (0x14e), region = 256 }
 0x158   : > { %359 = sst [smem:[%s437_s24]] %s357_s17 }
 0x15c PF:  { %s576_s1 = sld [smem:[#allocation13 + $0x80]]  ;;  %p537_p2 = scmp.ge.s32.totalorder %s1563_s26, 6 }
 0x15d   :  { %s1055_s20 = smov (!%p537_p2), %s1563_s26  }
 0x15e   :  { %538 = sbr.rel (%p537_p2) target bundleno = 368 (0x170), region = 261 }
 0x165 LB: > { %s367_s25 = sshra.s32 %s1057_s20, 7  ;;  %s372_s7 = sand.u32 127, %s1057_s20  ;;  %s1057_s20 = sphi %s1055_s20, %s364_s20  }
 0x166   : > { %s577_s8 = sshll.u32 %s367_s25, 7  ;;  %s364_s20 = sadd.s32 1, %s1057_s20  }
 0x167   : > { %s439_s2 = sadd.s32 %s577_s8, %s372_s7  ;;  %p363_p4 = scmp.ge.s32.totalorder %s364_s20, 6 }
 0x168   : > { %s440_s6 = scalar_lea.smem [#allocation13], %s439_s2 }
 0x169   : > { %s441_s22 = scalar_lea.smem %s440_s6, 128 [#allocation13]  ;;  %366 = sbr.rel (!%p363_p4) target bundleno = 357 (0x165), region = 267 }
 0x16a   : > { %375 = sst [smem:[%s441_s22]] %s576_s1 }
 0x170 PF:  { %s857_s28 = scalar_lea.hbm %s1516_s3, 32 }
 0x171   :  { %p858_p13 = scmp.ne.s32.totalorder %s1516_s3, %s857_s28  ;;  %p861_p6 = scmp.lt.u32.totalorder %s857_s28, %s1516_s3 }
 0x173   :  { %p863_p11 = pnand %p861_p6, %p858_p13 }
 0x175   :  { %866 = shalt.err (!%p863_p11)
}
 0x176   :  { %s1063_s12 = smov [#allocation13]  }
 0x177   :  { %383 = dma.smem_to_hbm %s1063_s12, 32, %s1516_s3, [#allocation8]  }
 0x178   :  { %965 = dma.done.wait [#allocation8], 32  }
 0x179   :  { %966 = vsyncadd [#allocation8], 4294967264 }
 0x17a   :  { %387 = sfence }
 0x17b   :  { %388 = vsyncpa [#allocation7], 1 }
 0x17c   :  { %389 = vsyncpa [#allocation8], 1 }
 0x17d   :  { %390 = vsyncpa [#allocation9], 1 }
 0x17e   :  { %391 = vsyncpa [#allocation12], 1 }

</bundles_post_ra>
